<compile_context>
chip_gen: v5e
topology: v5e:2x2
jax: 0.10.0
libtpu: 0.0.40
codegen_flags: <defaults>
</compile_context>

<pallas_src>
import jax
import jax.numpy as jnp
from jax.experimental import pallas as pl
from jax.experimental.pallas import tpu as pltpu


# ----------------------------- kernels -------------------------------------- #

def _linear_kernel(x_ref, w_ref, b_ref, o_ref):
    """Single-K-step tile: o = X @ W' + b'  (scalers pre-folded into W', b')."""
    o_ref[...] = (
        jnp.dot(x_ref[...], w_ref[...], preferred_element_type=jnp.float32)
        + b_ref[...]
    ).astype(o_ref.dtype)


def _linear_kacc_kernel(x_ref, w_ref, b_ref, o_ref, acc_ref):
    """K-tiled tile: f32 accumulator, init at k==0, bias-add + store at k==last."""
    @pl.when(pl.program_id(2) == 0)
    def _init():
        acc_ref[...] = jnp.zeros_like(acc_ref)

    acc_ref[...] += jnp.dot(x_ref[...], w_ref[...],
                            preferred_element_type=jnp.float32)

    @pl.when(pl.program_id(2) == pl.num_programs(2) - 1)
    def _finalize():
        o_ref[...] = (acc_ref[...] + b_ref[...]).astype(o_ref.dtype)


# ----------------------------- helpers --------------------------------------- #

def _round_up(x, m):
    return ((x + m - 1) // m) * m


def _vmem_capacity_bytes():
    """Generation-aware VMEM size (128 MiB on v5e/v6e, 64 MiB per TensorCore on v7x)."""
    try:
        return int(pltpu.get_tpu_info().vmem_capacity_bytes)
    except Exception:
        return 64 << 20          # conservative fallback (v7x per-core VMEM)


def _sublane_multiple(elem_bytes):
    # bf16 packs 16 rows per vreg, 1-byte dtypes 32, f32 8: keeps X-tile loads unmasked.
    if elem_bytes >= 4:
        return 8
    return 16 if elem_bytes == 2 else 32


def _choose_w_tiles(D, O, elem_bytes, vmem_cap):
    """(D_pad, O_pad, tk, tn), chosen once at weight-prep time.

    Preference (lane/MXU aligned, 256-multiples where the dims allow):
      1. whole W resident in VMEM, single copy   -> W read from HBM exactly once
      2. N tiled, K un-tiled                     -> still no accumulator pass
      3. K and N tiled                           -> accumulator kernel
    """
    D_pad = _round_up(D, 128)
    O_pad = _round_up(O, 128)
    w_budget = int(vmem_cap * 0.40)
    if D_pad * O_pad * elem_bytes <= w_budget:                       # 1. resident
        return D_pad, O_pad, D_pad, O_pad
    for tn in (2048, 1024, 512, 256):                                # 2. tile N only
        if tn <= O_pad and D_pad * tn * elem_bytes <= w_budget // 2:
            return D_pad, _round_up(O, tn), D_pad, tn
    tn_cands = [c for c in (1024, 512, 256, 128) if c <= O_pad] or [O_pad]
    for tk in (4096, 2048, 1024, 512):                               # 3. tile K and N
        if tk > D_pad:
            continue
        for tn in tn_cands:
            if 2 * tk * tn * elem_bytes <= w_budget:
                return _round_up(D, tk), _round_up(O, tn), tk, tn
    return _round_up(D, 512), _round_up(O, tn_cands[-1]), 512, tn_cands[-1]


def _pick_tm(B, tk, tn, elem_bytes, row_bias, k_tiled, vmem_cap):
    """Largest batch tile fitting the generation-aware VMEM budget."""
    sub = _sublane_multiple(elem_bytes)
    per_row = (2 * tk * elem_bytes                     # X tile (double-buffered)
               + 2 * tn * 4                            # output tile (f32, double-buffered)
               + (2 * tn * 4 if row_bias else 0)       # per-row bias tile
               + (tn * 4 if k_tiled else 0))           # f32 accumulator scratch
    budget = int(vmem_cap * 0.35)
    tm = 1024
    while tm > sub and tm * per_row > budget:
        tm //= 2
    tm = max(sub, (tm // sub) * sub)
    if B <= tm:
        return B                                       # one block == full batch dim
    return min(tm, _round_up(B, sub))


# ----------------------------- pallas launcher -------------------------------- #

def _pallas_linear(x, W, b_arr, row_bias, *, D_pad, O_pad, tk, tn,
                   elem_bytes, vmem_cap, phys_vmem_cap):
    B = x.shape[0]
    Kb = D_pad // tk
    Nb = O_pad // tn
    tm = _pick_tm(B, tk, tn, elem_bytes, row_bias, Kb > 1, vmem_cap)
    Mb = pl.cdiv(B, tm)

    resident_w = (Kb == 1 and Nb == 1)
    # v7x has two TensorCores: if the batch collapses to a single tile, split the
    # output columns so grid axis 1 ("parallel") gives the second core work.  W HBM
    # traffic is unchanged (Mb == 1); harmless one extra step on single-TC v5e/v6e.
    if resident_w and Mb == 1 and O_pad >= 256 and O_pad % 256 == 0:
        tn = O_pad // 2
        Nb = 2
        resident_w = False

    grid = (Mb, Nb, Kb)
    kernel = _linear_kernel if Kb == 1 else _linear_kacc_kernel
    scratch = [] if Kb == 1 else [pltpu.VMEM((tm, tn), jnp.float32)]

    x_spec = pl.BlockSpec((tm, tk), lambda i, j, k: (i, k))
    out_spec = pl.BlockSpec((tm, tn), lambda i, j, k: (i, j))
    if row_bias:
        b_spec = pl.BlockSpec((tm, tn), lambda i, j, k: (i, j))
    else:
        b_spec = pl.BlockSpec((1, tn), lambda i, j, k: (0, j))

    # Blocked W (streamed tiles, double-buffered) vs. fully resident W: the resident
    # path keeps exactly ONE VMEM copy (single-buffered whole-array placement -- the
    # intent of the review's Buffered(1) item) and W is DMA'd from HBM exactly once.
    w_blocked_spec = pl.BlockSpec((tk, tn), lambda i, j, k: (k, j))
    w_resident_spec = pl.BlockSpec(memory_space=pltpu.MemorySpace.VMEM)

    w_vmem = (D_pad * O_pad * elem_bytes if resident_w
              else 2 * tk * tn * elem_bytes)
    b_rows = tm if row_bias else 1
    vmem_need = (2 * tm * tk * elem_bytes + w_vmem + 2 * b_rows * tn * 4
                 + 2 * tm * tn * 4 + (0 if Kb == 1 else tm * tn * 4))
    vmem_limit = int(min(max(vmem_need + (8 << 20), 32 << 20),
                         max(int(phys_vmem_cap * 0.9), vmem_need + (4 << 20))))

    w_hbm_reads = 1 if (resident_w or Mb == 1) else Mb
    cost = pl.CostEstimate(
        flops=2 * B * D_pad * O_pad,
        transcendentals=0,
        bytes_accessed=(B * D_pad * elem_bytes
                        + w_hbm_reads * D_pad * O_pad * elem_bytes
                        + B * O_pad * 4
                        + b_rows * O_pad * 4),
    )

    def call(w_spec):
        return pl.pallas_call(
            kernel,
            out_shape=jax.ShapeDtypeStruct((B, O_pad), jnp.float32),
            grid=grid,
            in_specs=[x_spec, w_spec, b_spec],
            out_specs=out_spec,
            scratch_shapes=scratch,
            compiler_params=pltpu.CompilerParams(
                dimension_semantics=("parallel", "parallel", "arbitrary"),
                vmem_limit_bytes=vmem_limit),
            cost_estimate=cost,
        )(x, W, b_arr)

    if resident_w:
        try:
            return call(w_resident_spec)
        except Exception:
            # Fallback: blocked W with a constant index map (still fetched once,
            # but double-buffered). Identical results, slightly more VMEM.
            return call(w_blocked_spec)
    return call(w_blocked_spec)


# ----------------------------- module wrapper --------------------------------- #

class ONNXModelWrapperTPU:
    """Pallas TPU port of ONNXModelWrapper.forward.

    The wrapped `model` is stood in for by a linear head over the flattened lookback
    window (W: [lookback*features, out]); this lets both scalers be folded into the
    weights once at construction time:
        W' = diag(1/x_std) @ W @ diag(y_std)
        b' = y_std * (b - (x_mean/x_std) @ W) + y_mean
    so the per-call kernel is a pure MXU pass  X @ W' + b' (+ y_std-scaled bias).
    """

    def __init__(self, lookback, x_mean, x_std, W, b, y_mean, y_std,
                 *, matmul_dtype=jnp.bfloat16, vmem_cap_bytes=None):
        f32 = jnp.float32
        D, O = W.shape
        T = int(lookback)
        F = x_mean.shape[0]
        assert T * F == D, "W rows must equal lookback * num_features"

        inv_xstd = jnp.tile(1.0 / x_std.astype(f32), T)              # (D,)
        xmean = jnp.tile(x_mean.astype(f32), T)                      # (D,)
        y_std_f = y_std.astype(f32)                                  # (O,)
        W32 = W.astype(f32)
        W_fold = (inv_xstd[:, None] * W32) * y_std_f[None, :]        # (D, O)
        b_fold = (y_std_f * (b.astype(f32) - (xmean * inv_xstd) @ W32)
                  + y_mean.astype(f32)).reshape(1, O)                # (1, O)

        self._mm_dtype = jnp.dtype(matmul_dtype)
        elem = self._mm_dtype.itemsize
        self._phys_vmem_cap = _vmem_capacity_bytes()
        self._vmem_cap = int(vmem_cap_bytes) if vmem_cap_bytes else self._phys_vmem_cap

        D_pad, O_pad, tk, tn = _choose_w_tiles(D, O, elem, self._vmem_cap)
        # TODO(synk): on v7x-only deployments W could additionally be stored as
        # per-column-scaled fp8 (e4m3) for ~2x fewer W HBM bytes; not portable to
        # v5e/v6e, so bf16/f32 is kept here.
        self._W = jnp.pad(W_fold, ((0, D_pad - D), (0, O_pad - O))).astype(self._mm_dtype)
        self._b_fold = jnp.pad(b_fold, ((0, 0), (0, O_pad - O)))     # f32, (1, O_pad)
        self._y_std_row = y_std_f.reshape(1, O)
        self.D, self.O = D, O
        self.D_pad, self.O_pad, self.tk, self.tn = D_pad, O_pad, tk, tn
        self._elem = elem

    def __call__(self, X, bias=None):
        B = X.shape[0]
        x = X.reshape(B, -1)
        assert x.shape[1] == self.D
        x = x.astype(self._mm_dtype)                   # X_mask == ones_like(X): dropped
        if self.D_pad != self.D:
            x = jnp.pad(x, ((0, 0), (0, self.D_pad - self.D)))

        if bias is None:
            b_arr, row_bias = self._b_fold, False
        else:
            # external bias enters model() before inverse scaling -> scale by y_std,
            # and pre-add the folded scaler bias so the kernel streams ONE bias operand.
            b_arr = (jnp.pad(bias.astype(jnp.float32) * self._y_std_row,
                             ((0, 0), (0, self.O_pad - self.O)))
                     + self._b_fold)
            row_bias = True

        out = _pallas_linear(x, self._W, b_arr, row_bias,
                             D_pad=self.D_pad, O_pad=self.O_pad,
                             tk=self.tk, tn=self.tn, elem_bytes=self._elem,
                             vmem_cap=self._vmem_cap,
                             phys_vmem_cap=self._phys_vmem_cap)
        return out[:, :self.O]


def onnx_model_wrapper_forward(X, x_mean, x_std, W, b, y_mean, y_std, bias=None,
                               *, matmul_dtype=jnp.bfloat16):
    """One-shot convenience wrapper. For repeated calls, construct ONNXModelWrapperTPU
    once so the weight fold/pad/cast is hoisted out of the per-call path."""
    m = ONNXModelWrapperTPU(X.shape[1], x_mean, x_std, W, b, y_mean, y_std,
                            matmul_dtype=matmul_dtype)
    return m(X, bias)


# ----------------------------- reference ------------------------------------- #

def _reference(X, x_mean, x_std, W, b, y_mean, y_std, bias=None):
    B, T, F = X.shape
    O = W.shape[-1]
    xs = (X - x_mean.reshape(1, 1, F)) / x_std.reshape(1, 1, F)
    xs = xs * jnp.ones_like(xs)                        # X_mask = ones_like(X)
    z = xs.reshape(B, T * F) @ W + b.reshape(1, O)
    if bias is not None:
        z = z + bias
    return z * y_std.reshape(1, O) + y_mean.reshape(1, O)


# ----------------------------- tests ------------------------------------------ #

if __name__ == "__main__":
    def make_inputs(key, B, T, F, O):
        kx, kw, kb, kbias, kxm, kxs, kym, kys = jax.random.split(key, 8)
        X = jax.random.normal(kx, (B, T, F), dtype=jnp.float32)
        W = jax.random.normal(kw, (T * F, O), dtype=jnp.float32) * 0.05
        b = jax.random.normal(kb, (O,), dtype=jnp.float32) * 0.1
        bias = jax.random.normal(kbias, (B, O), dtype=jnp.float32) * 0.1
        x_mean = jax.random.normal(kxm, (F,), dtype=jnp.float32)
        x_std = jnp.abs(jax.random.normal(kxs, (F,), dtype=jnp.float32)) + 0.5
        y_mean = jax.random.normal(kym, (O,), dtype=jnp.float32)
        y_std = jnp.abs(jax.random.normal(kys, (O,), dtype=jnp.float32)) + 0.5
        return X, W, b, bias, x_mean, x_std, y_mean, y_std

    def rel_l2(a, ref):
        return float(jnp.linalg.norm(a - ref) / (jnp.linalg.norm(ref) + 1e-12))

    root = jax.random.PRNGKey(0)
    k_small, k_big = jax.random.split(root, 2)

    # ---- small shapes: batch=2, lookback=8, features=16, out=32 ----------------
    B, T, F, O = 2, 8, 16, 32
    X, W, b, bias, x_mean, x_std, y_mean, y_std = make_inputs(k_small, B, T, F, O)
    Z_ref_b = _reference(X, x_mean, x_std, W, b, y_mean, y_std, bias)
    Z_ref_nb = _reference(X, x_mean, x_std, W, b, y_mean, y_std, None)

    # 1) float32 path (tight check of the fold + kernel algebra), with external bias
    m32 = ONNXModelWrapperTPU(T, x_mean, x_std, W, b, y_mean, y_std,
                              matmul_dtype=jnp.float32)
    Z = jax.block_until_ready(m32(X, bias))
    assert Z.shape == (B, O)
    assert jnp.allclose(Z, Z_ref_b, atol=5e-4, rtol=5e-4), "f32 + bias mismatch"

    # 2) float32, no external bias (exercises the (1, O_pad) folded-bias operand)
    Z2 = jax.block_until_ready(m32(X, None))
    assert jnp.allclose(Z2, Z_ref_nb, atol=5e-4, rtol=5e-4), "f32 no-bias mismatch"

    # 3) default bf16 path (MXU-native streaming dtype, f32 accumulation)
    m16 = ONNXModelWrapperTPU(T, x_mean, x_std, W, b, y_mean, y_std)  # bf16 default
    Z3 = jax.block_until_ready(m16(X, bias))
    assert Z3.shape == (B, O)
    assert rel_l2(Z3, Z_ref_b) < 3e-2, "bf16 + bias mismatch"

    # 4) K/N-tiled accumulator path, forced by shrinking the VMEM budget so the
    #    folded W cannot stay resident (test/tuning knob); still small batch.
    B2, T2, F2, O2 = 16, 8, 512, 512
    X4, W4, b4, bias4, xm4, xs4, ym4, ys4 = make_inputs(k_big, B2, T2, F2, O2)
    m_tiled = ONNXModelWrapperTPU(T2, xm4, xs4, W4, b4, ym4, ys4,
                                  vmem_cap_bytes=2 << 20)
    Z4 = jax.block_until_ready(m_tiled(X4, bias4))
    Z4_ref = _reference(X4, xm4, xs4, W4, b4, ym4, ys4, bias4)
    assert Z4.shape == (B2, O2)
    assert rel_l2(Z4, Z4_ref) < 3e-2, "tiled (K/N grid) bf16 path mismatch"

    # TODO(synk): the wrapped `model` in the original code is an arbitrary Module
    # (only its (X, mask, bias) signature is known); a linear head over the flattened
    # lookback window is used as the synthetic stand-in, which is what allows the
    # scalers to be folded into W/b ahead of the kernel.
    print("KERNEL_OK")
</pallas_src>

<mosaic_0001>
module attributes {stable_mosaic.version = 11 : i64} {
  func.func @_linear_kernel(%arg0: i32, %arg1: i32, %arg2: i32, %arg3: memref<2x128xf32, #tpu.memory_space<vmem>>, %arg4: memref<128x128xf32, #tpu.memory_space<vmem>>, %arg5: memref<2x128xf32, #tpu.memory_space<vmem>>, %arg6: memref<2x128xf32, #tpu.memory_space<vmem>>) attributes {dimension_semantics = [#tpu.dimension_semantics<parallel>, #tpu.dimension_semantics<parallel>, #tpu.dimension_semantics<arbitrary>], iteration_bounds = array<i64: 1, 1, 1>, scalar_prefetch = 0 : i64, scratch_operands = 0 : i64, tpu.core_type = #tpu.core_type<tc>, window_params = [{transform_indices = @transform_0, window_bounds = array<i64: 2, 128>}, {pipeline_mode = #tpu.pipeline_mode<synchronous>, transform_indices = @transform_1, window_bounds = array<i64: 128, 128>}, {transform_indices = @transform_2, window_bounds = array<i64: 2, 128>}, {transform_indices = @transform_3, window_bounds = array<i64: 2, 128>}]} {
    %c0 = arith.constant 0 : index
    %c0_0 = arith.constant 0 : index
    %0 = vector.load %arg3[%c0, %c0_0] : memref<2x128xf32, #tpu.memory_space<vmem>>, vector<2x128xf32>
    %c0_1 = arith.constant 0 : index
    %c0_2 = arith.constant 0 : index
    %1 = vector.load %arg4[%c0_1, %c0_2] : memref<128x128xf32, #tpu.memory_space<vmem>>, vector<128x128xf32>
    %cst = arith.constant dense<0.000000e+00> : vector<2x128xf32>
    %2 = tpu.matmul %0, %1, %cst {dimension_numbers = #tpu.dot_dimension_numbers<[1], [0], [0], [1], [0, 0, 1, 1], [], []>} : vector<2x128xf32>, vector<128x128xf32>, vector<2x128xf32> -> vector<2x128xf32>
    %c0_3 = arith.constant 0 : index
    %c0_4 = arith.constant 0 : index
    %3 = vector.load %arg5[%c0_3, %c0_4] : memref<2x128xf32, #tpu.memory_space<vmem>>, vector<2x128xf32>
    %4 = arith.addf %2, %3 : vector<2x128xf32>
    %c0_5 = arith.constant 0 : index
    %c0_6 = arith.constant 0 : index
    %5 = vector.load %arg6[%c0_5, %c0_6] : memref<2x128xf32, #tpu.memory_space<vmem>>, vector<2x128xf32>
    tpu.vector_store %arg6[%c0_5, %c0_6], %4 {strides = array<i32>} : memref<2x128xf32, #tpu.memory_space<vmem>>, vector<2x128xf32>,
    return
  }
  func.func @transform_0(%arg0: i32, %arg1: i32, %arg2: i32) -> (i32, i32) {
    %c0_i32 = arith.constant 0 : i32
    return %arg0, %arg2 : i32, i32
  }
  func.func @transform_1(%arg0: i32, %arg1: i32, %arg2: i32) -> (i32, i32) {
    %c0_i32 = arith.constant 0 : i32
    %c0_i32_0 = arith.constant 0 : i32
    %c0_i32_1 = arith.constant 0 : i32
    return %c0_i32, %c0_i32_0 : i32, i32
  }
  func.func @transform_2(%arg0: i32, %arg1: i32, %arg2: i32) -> (i32, i32) {
    %c0_i32 = arith.constant 0 : i32
    return %arg0, %arg1 : i32, i32
  }
  func.func @transform_3(%arg0: i32, %arg1: i32, %arg2: i32) -> (i32, i32) {
    %c0_i32 = arith.constant 0 : i32
    return %arg0, %arg1 : i32, i32
  }
}

module attributes {stable_mosaic.version = 11 : i64} {
  func.func @_linear_kernel(%arg0: i32, %arg1: i32, %arg2: i32, %arg3: memref<2x128xf32, #tpu.memory_space<vmem>>, %arg4: memref<128x128xf32, #tpu.memory_space<vmem>>, %arg5: memref<2x128xf32, #tpu.memory_space<vmem>>, %arg6: memref<2x128xf32, #tpu.memory_space<vmem>>) attributes {dimension_semantics = [#tpu.dimension_semantics<parallel>, #tpu.dimension_semantics<parallel>, #tpu.dimension_semantics<arbitrary>], iteration_bounds = array<i64: 1, 1, 1>, scalar_prefetch = 0 : i64, scratch_operands = 0 : i64, tpu.core_type = #tpu.core_type<tc>, window_params = [{transform_indices = @transform_0, window_bounds = array<i64: 2, 128>}, {transform_indices = @transform_1, window_bounds = array<i64: 128, 128>}, {transform_indices = @transform_2, window_bounds = array<i64: 2, 128>}, {transform_indices = @transform_3, window_bounds = array<i64: 2, 128>}]} {
    %c0 = arith.constant 0 : index
    %c0_0 = arith.constant 0 : index
    %0 = vector.load %arg3[%c0, %c0_0] : memref<2x128xf32, #tpu.memory_space<vmem>>, vector<2x128xf32>
    %c0_1 = arith.constant 0 : index
    %c0_2 = arith.constant 0 : index
    %1 = vector.load %arg4[%c0_1, %c0_2] : memref<128x128xf32, #tpu.memory_space<vmem>>, vector<128x128xf32>
    %cst = arith.constant dense<0.000000e+00> : vector<2x128xf32>
    %2 = tpu.matmul %0, %1, %cst {dimension_numbers = #tpu.dot_dimension_numbers<[1], [0], [0], [1], [0, 0, 1, 1], [], []>} : vector<2x128xf32>, vector<128x128xf32>, vector<2x128xf32> -> vector<2x128xf32>
    %c0_3 = arith.constant 0 : index
    %c0_4 = arith.constant 0 : index
    %3 = vector.load %arg5[%c0_3, %c0_4] : memref<2x128xf32, #tpu.memory_space<vmem>>, vector<2x128xf32>
    %4 = arith.addf %2, %3 : vector<2x128xf32>
    %c0_5 = arith.constant 0 : index
    %c0_6 = arith.constant 0 : index
    %5 = vector.load %arg6[%c0_5, %c0_6] : memref<2x128xf32, #tpu.memory_space<vmem>>, vector<2x128xf32>
    tpu.vector_store %arg6[%c0_5, %c0_6], %4 {strides = array<i32>} : memref<2x128xf32, #tpu.memory_space<vmem>>, vector<2x128xf32>,
    return
  }
  func.func @transform_0(%arg0: i32, %arg1: i32, %arg2: i32) -> (i32, i32) {
    %c0_i32 = arith.constant 0 : i32
    return %arg0, %arg2 : i32, i32
  }
  func.func @transform_1(%arg0: i32, %arg1: i32, %arg2: i32) -> (i32, i32) {
    %c0_i32 = arith.constant 0 : i32
    return %arg2, %arg1 : i32, i32
  }
  func.func @transform_2(%arg0: i32, %arg1: i32, %arg2: i32) -> (i32, i32) {
    %c0_i32 = arith.constant 0 : i32
    return %arg0, %arg1 : i32, i32
  }
  func.func @transform_3(%arg0: i32, %arg1: i32, %arg2: i32) -> (i32, i32) {
    %c0_i32 = arith.constant 0 : i32
    return %arg0, %arg1 : i32, i32
  }
}

</mosaic_0001>

<bundles_post_ra>
// kernel: tpu_custom_call.1
= control target key start
LH: loop header
LB: loop body
LE: loop exit
PB: predicated region body
PF: predicated region fallthrough
CT: control target
= control target key end

     0   :  { %8 = vsyncpa [#allocation3], 0  ;;  %s261_s0 = inlined_call_operand.hbm [shape: f32[2,128], index: 0, kind: input, shape index: {}]   ;;  %s262_s1 = inlined_call_operand.hbm [shape: f32[128,128], index: 1, kind: input, shape index: {}]   ;;  %s263_s2 = inlined_call_operand.hbm [shape: f32[2,128], index: 2, kind: input, shape index: {}]   ;;  %s264_s3 = inlined_call_operand.hbm [shape: f32[2,128], index: 3, kind: output, shape index: {}]  }
   0x1   :  { %9 = vsyncpa [#allocation6], 0  ;;  %s26_s14 = sshll.u32 %s262_s1, 4  ;;  %s27_s14 = int_to_ptr.hbm [resolvable:$true] %s26_s14 }
   0x2   :  { %10 = vsyncpa [#allocation4], 0  ;;  %s223_s15 = smov [#allocation5]   ;;  %s16_s19 = sshll.u32 %s261_s0, 4  ;;  %s17_s19 = int_to_ptr.hbm [resolvable:$true] %s16_s19 }
   0x3   :  { %s28_s16 = sshll.u32 %s223_s15, 4  ;;  %s224_s20 = smov 128   ;;  %s29_s16 = int_to_ptr.vmem [resolvable:$true] %s28_s16 }
   0x4   :  { %s225_s21 = smov 8   ;;  %s226_s22 = smov [#allocation2]  }
   0x5   :  { %34 = dma.hbm_to_vmem [thread:$0]  %s27_s14, 2048, %s29_s16, [#allocation6], %s224_s20, %s224_s20, %s225_s21  }
   0x6   :  { %s18_s23 = sshll.u32 %s226_s22, 4  ;;  %s40_s26 = sshll.u32 %s263_s2, 4  ;;  %s19_s23 = int_to_ptr.vmem [resolvable:$true] %s18_s23  ;;  %s41_s26 = int_to_ptr.hbm [resolvable:$true] %s40_s26 }
   0x7   :  { %21 = dma.hbm_to_vmem [thread:$0]  %s17_s19, 32, %s19_s23, [#allocation3]  }
   0x8   :  { %s227_s1 = smov [#allocation7]  }
   0x9   :  { %s42_s27 = sshll.u32 %s227_s1, 4  ;;  %s43_s27 = int_to_ptr.vmem [resolvable:$true] %s42_s27 }
   0xa   :  { %45 = dma.hbm_to_vmem [thread:$0]  %s41_s26, 32, %s43_s27, [#allocation6]  }
   0xb   :  { %217 = dma.done.wait [#allocation3], 32  }
   0xc   :  { %218 = vsyncadd [#allocation3], 4294967264 }
   0xd   :  { %219 = dma.done.wait [#allocation6], 2080  }
   0xe   :  { %220 = vsyncadd [#allocation6], 4294965216  ;;  %v74_v0 = vld [vmem:[#allocation5 + $0x78] sm:$0xff]  ;;  %v73_v1 = vld [vmem:[#allocation5 + $0x70] sm:$0xff]  ;;  %s228_s0 = smov [#allocation8]   ;;  %s104_s30 = sshll.u32 %s264_s3, 4  ;;  %s105_s30 = int_to_ptr.hbm [resolvable:$true] %s104_s30 }
   0xf   :  { %76 = vmatpush.msra.mxu0 %v74_v0  ;;  %v72_v2 = vld [vmem:[#allocation5 + $0x68] sm:$0xff]  ;;  %v71_v3 = vld [vmem:[#allocation5 + $0x60] sm:$0xff]  ;;  %v70_v4 = vld [vmem:[#allocation5 + $0x58] sm:$0xff]  ;;  %s102_s2 = sshll.u32 %s228_s0, 4  ;;  %s103_s2 = int_to_ptr.vmem [resolvable:$true] %s102_s2 }
  0x10   :  { %v69_v5 = vld [vmem:[#allocation5 + $0x50] sm:$0xff]  ;;  %v68_v6 = vld [vmem:[#allocation5 + $0x48] sm:$0xff]  ;;  %v67_v7 = vld [vmem:[#allocation5 + $0x40] sm:$0xff] }
  0x11   :  { %77 = vmatpush.msra.mxu0 %v73_v1  ;;  %v66_v8 = vld [vmem:[#allocation5 + $0x38] sm:$0xff]  ;;  %v65_v9 = vld [vmem:[#allocation5 + $0x30] sm:$0xff]  ;;  %v64_v10 = vld [vmem:[#allocation5 + $0x28] sm:$0xff] }
  0x12   :  { %v63_v11 = vld [vmem:[#allocation5 + $0x20] sm:$0xff]  ;;  %v62_v12 = vld [vmem:[#allocation5 + $0x18] sm:$0xff]  ;;  %v61_v13 = vld [vmem:[#allocation5 + $0x10] sm:$0xff] }
  0x13   :  { %78 = vmatpush.msra.mxu0 %v72_v2  ;;  %v60_v14 = vld [vmem:[#allocation5 + $0x8] sm:$0xff]  ;;  %v59_v15 = vld [vmem:[#allocation5] sm:$0xff]  ;;  %v58_v16 = vld [vmem:[#allocation2] sm:$0x3] }
  0x14   :  { %v75_v17 = vld [vmem:[#allocation7] sm:$0x3] }
  0x15   :  { %79 = vmatpush.msra.mxu0 %v71_v3 }
  0x17   :  { %80 = vmatpush.msra.mxu0 %v70_v4 }
  0x19   :  { %81 = vmatpush.msra.mxu0 %v69_v5 }
  0x1b   :  { %82 = vmatpush.msra.mxu0 %v68_v6 }
  0x1d   :  { %83 = vmatpush.msra.mxu0 %v67_v7 }
  0x1f   :  { %84 = vmatpush.msra.mxu0 %v66_v8 }
  0x21   :  { %85 = vmatpush.msra.mxu0 %v65_v9 }
  0x23   :  { %86 = vmatpush.msra.mxu0 %v64_v10 }
  0x25   :  { %87 = vmatpush.msra.mxu0 %v63_v11 }
  0x27   :  { %88 = vmatpush.msra.mxu0 %v62_v12 }
  0x29   :  { %89 = vmatpush.msra.mxu0 %v61_v13 }
  0x2b   :  { %90 = vmatpush.msra.mxu0 %v60_v14 }
  0x2d   :  { %91 = vmatpush.msra.mxu0 %v59_v15 }
  0x2e   :  { %92 = vmatmul.f32.vlgmr.msra.gmra.mxu0 %v58_v16 }
  0xab   :  { %v93_v18 = vpop.f32.mrf.mxu0 }
  0xac   :  { %v94_v19 = vadd.f32 %v93_v18, %v75_v17 }
  0xae   :  { %96 = vst [vmem:[#allocation8] sm:$0x3] %v94_v19 }
  0xaf   :  { %107 = dma.vmem_to_hbm [thread:$0]  %s103_s2, 32, %s105_s30, [#allocation4]  }
  0xb0   :  { %221 = dma.done.wait [#allocation4], 32  }
  0xb1   :  { %222 = vsyncadd [#allocation4], 4294967264 }
  0xb2   :  { %112 = vsyncpa [#allocation3], 1 }
  0xb3   :  { %113 = vsyncpa [#allocation6], 1 }
  0xb4   :  { %114 = vsyncpa [#allocation4], 1 }

// kernel: tpu_custom_call.1
= control target key start
LH: loop header
LB: loop body
LE: loop exit
PB: predicated region body
PF: predicated region fallthrough
CT: control target
= control target key end

     0   :  { %8 = vsyncpa [#allocation3], 0  ;;  %s261_s0 = inlined_call_operand.hbm [shape: f32[2,128], index: 0, kind: input, shape index: {}]   ;;  %s262_s1 = inlined_call_operand.hbm [shape: f32[128,128], index: 1, kind: input, shape index: {}]   ;;  %s263_s2 = inlined_call_operand.hbm [shape: f32[2,128], index: 2, kind: input, shape index: {}]   ;;  %s264_s3 = inlined_call_operand.hbm [shape: f32[2,128], index: 3, kind: output, shape index: {}]  }
   0x1   :  { %9 = vsyncpa [#allocation6], 0  ;;  %s26_s14 = sshll.u32 %s262_s1, 4  ;;  %s27_s14 = int_to_ptr.hbm [resolvable:$true] %s26_s14 }
   0x2   :  { %10 = vsyncpa [#allocation4], 0  ;;  %s223_s15 = smov [#allocation5]   ;;  %s16_s19 = sshll.u32 %s261_s0, 4  ;;  %s17_s19 = int_to_ptr.hbm [resolvable:$true] %s16_s19 }
   0x3   :  { %s28_s16 = sshll.u32 %s223_s15, 4  ;;  %s224_s20 = smov 128   ;;  %s29_s16 = int_to_ptr.vmem [resolvable:$true] %s28_s16 }
   0x4   :  { %s225_s21 = smov 8   ;;  %s226_s22 = smov [#allocation2]  }
   0x5   :  { %34 = dma.hbm_to_vmem [thread:$0]  %s27_s14, 2048, %s29_s16, [#allocation6], %s224_s20, %s224_s20, %s225_s21  }
   0x6   :  { %s18_s23 = sshll.u32 %s226_s22, 4  ;;  %s40_s26 = sshll.u32 %s263_s2, 4  ;;  %s19_s23 = int_to_ptr.vmem [resolvable:$true] %s18_s23  ;;  %s41_s26 = int_to_ptr.hbm [resolvable:$true] %s40_s26 }
   0x7   :  { %21 = dma.hbm_to_vmem [thread:$0]  %s17_s19, 32, %s19_s23, [#allocation3]  }
   0x8   :  { %s227_s1 = smov [#allocation7]  }
   0x9   :  { %s42_s27 = sshll.u32 %s227_s1, 4  ;;  %s43_s27 = int_to_ptr.vmem [resolvable:$true] %s42_s27 }
   0xa   :  { %45 = dma.hbm_to_vmem [thread:$0]  %s41_s26, 32, %s43_s27, [#allocation6]  }
   0xb   :  { %217 = dma.done.wait [#allocation3], 32  }
   0xc   :  { %218 = vsyncadd [#allocation3], 4294967264 }
   0xd   :  { %219 = dma.done.wait [#allocation6], 2080  }
   0xe   :  { %220 = vsyncadd [#allocation6], 4294965216  ;;  %v74_v0 = vld [vmem:[#allocation5 + $0x78] sm:$0xff]  ;;  %v73_v1 = vld [vmem:[#allocation5 + $0x70] sm:$0xff]  ;;  %s228_s0 = smov [#allocation8]   ;;  %s104_s30 = sshll.u32 %s264_s3, 4  ;;  %s105_s30 = int_to_ptr.hbm [resolvable:$true] %s104_s30 }
   0xf   :  { %76 = vmatpush.msra.mxu0 %v74_v0  ;;  %v72_v2 = vld [vmem:[#allocation5 + $0x68] sm:$0xff]  ;;  %v71_v3 = vld [vmem:[#allocation5 + $0x60] sm:$0xff]  ;;  %v70_v4 = vld [vmem:[#allocation5 + $0x58] sm:$0xff]  ;;  %s102_s2 = sshll.u32 %s228_s0, 4  ;;  %s103_s2 = int_to_ptr.vmem [resolvable:$true] %s102_s2 }
  0x10   :  { %v69_v5 = vld [vmem:[#allocation5 + $0x50] sm:$0xff]  ;;  %v68_v6 = vld [vmem:[#allocation5 + $0x48] sm:$0xff]  ;;  %v67_v7 = vld [vmem:[#allocation5 + $0x40] sm:$0xff] }
  0x11   :  { %77 = vmatpush.msra.mxu0 %v73_v1  ;;  %v66_v8 = vld [vmem:[#allocation5 + $0x38] sm:$0xff]  ;;  %v65_v9 = vld [vmem:[#allocation5 + $0x30] sm:$0xff]  ;;  %v64_v10 = vld [vmem:[#allocation5 + $0x28] sm:$0xff] }
  0x12   :  { %v63_v11 = vld [vmem:[#allocation5 + $0x20] sm:$0xff]  ;;  %v62_v12 = vld [vmem:[#allocation5 + $0x18] sm:$0xff]  ;;  %v61_v13 = vld [vmem:[#allocation5 + $0x10] sm:$0xff] }
  0x13   :  { %78 = vmatpush.msra.mxu0 %v72_v2  ;;  %v60_v14 = vld [vmem:[#allocation5 + $0x8] sm:$0xff]  ;;  %v59_v15 = vld [vmem:[#allocation5] sm:$0xff]  ;;  %v58_v16 = vld [vmem:[#allocation2] sm:$0x3] }
  0x14   :  { %v75_v17 = vld [vmem:[#allocation7] sm:$0x3] }
  0x15   :  { %79 = vmatpush.msra.mxu0 %v71_v3 }
  0x17   :  { %80 = vmatpush.msra.mxu0 %v70_v4 }
  0x19   :  { %81 = vmatpush.msra.mxu0 %v69_v5 }
  0x1b   :  { %82 = vmatpush.msra.mxu0 %v68_v6 }
  0x1d   :  { %83 = vmatpush.msra.mxu0 %v67_v7 }
  0x1f   :  { %84 = vmatpush.msra.mxu0 %v66_v8 }
  0x21   :  { %85 = vmatpush.msra.mxu0 %v65_v9 }
  0x23   :  { %86 = vmatpush.msra.mxu0 %v64_v10 }
  0x25   :  { %87 = vmatpush.msra.mxu0 %v63_v11 }
  0x27   :  { %88 = vmatpush.msra.mxu0 %v62_v12 }
  0x29   :  { %89 = vmatpush.msra.mxu0 %v61_v13 }
  0x2b   :  { %90 = vmatpush.msra.mxu0 %v60_v14 }
  0x2d   :  { %91 = vmatpush.msra.mxu0 %v59_v15 }
  0x2e   :  { %92 = vmatmul.f32.vlgmr.msra.gmra.mxu0 %v58_v16 }
  0xab   :  { %v93_v18 = vpop.f32.mrf.mxu0 }
  0xac   :  { %v94_v19 = vadd.f32 %v93_v18, %v75_v17 }
  0xae   :  { %96 = vst [vmem:[#allocation8] sm:$0x3] %v94_v19 }
  0xaf   :  { %107 = dma.vmem_to_hbm [thread:$0]  %s103_s2, 32, %s105_s30, [#allocation4]  }
  0xb0   :  { %221 = dma.done.wait [#allocation4], 32  }
  0xb1   :  { %222 = vsyncadd [#allocation4], 4294967264 }
  0xb2   :  { %112 = vsyncpa [#allocation3], 1 }
  0xb3   :  { %113 = vsyncpa [#allocation6], 1 }
  0xb4   :  { %114 = vsyncpa [#allocation4], 1 }

</bundles_post_ra>
